<compile_context>
chip_gen: v5e
topology: v5e:2x2
jax: 0.10.0
libtpu: 0.0.40
codegen_flags: <defaults>
</compile_context>

<pallas_src>
import jax
import jax.numpy as jnp
from jax import lax
from jax.experimental import pallas as pl
from jax.experimental.pallas import tpu as pltpu

MARGIN = 0.3  # matches OriTripletLoss(margin=0.3)


def _round_up(v, m):
    return (v + m - 1) // m * m


def _device_kind():
    try:
        return jax.devices()[0].device_kind.lower()
    except Exception:
        return ""


def _mxu_rows(kind):
    # v2-v5 have a 128x128 MXU; v6e/v7x (and unknown/newer) have 256x256.
    for v in ("v2", "v3", "v4", "v5"):
        if v in kind:
            return 128
    return 256


def _pick_row_tiles(n, kind):
    """Return (n_pad, tm): padded row count and row-tile size (tm | n_pad, tm % 8 == 0)."""
    n8 = _round_up(max(n, 1), 8)
    if n8 <= 16:
        return n8, n8                      # tiny batch: one tile, no extra grid overhead
    if n8 <= 128:
        n_pad = _round_up(n, 16)
        return n_pad, n_pad // 2           # two row tiles so v7x's two TCs both get work
    big = 256 if (_mxu_rows(kind) == 256 and n >= 512) else 128
    n_pad = _round_up(n, big)
    return n_pad, big


def _vmem_limit_bytes(kind, x_bytes, tm, n_pad):
    work = tm * n_pad * 4                      # one (tm, n_pad) f32 intermediate
    need = 2 * x_bytes + 6 * work + (4 << 20)  # double-buffered x + temporaries + headroom
    if any(v in kind for v in ("v2", "v3", "v4", "v5", "v6")):
        cap = 100 << 20                        # 128 MiB physical VMEM chips
    else:
        cap = 56 << 20                         # v7x (64 MiB physical) / unknown: stay safe
    return int(min(max(need, 32 << 20), cap))


def _make_kernel(n_real, tm, margin, gram_precision):
    """Kernel closure over static sizes (real batch, row-tile size), margin, precision."""

    def kernel(x_ref, sqhc_ref, sqhr_ref, tcol_ref, trow_ref, out_ref):
        i = pl.program_id(0)
        row0 = pl.multiple_of(i * tm, tm)

        xa = x_ref[...]                       # (n_pad, d_pad) resident block (f32 or bf16)
        xr = x_ref[pl.ds(row0, tm), :]        # (tm, d_pad) row tile sliced from it (no 2nd DMA)

        # Gram matrix on the MXU: g[r, j] = <x_row_r, x_j>.
        g = lax.dot_general(xr, xa, (((1,), (1,)), ((), ())),
                            preferred_element_type=jnp.float32,
                            precision=gram_precision)              # (tm, n_pad)

        # Half squared distances: 0.5|a|^2 + 0.5|b|^2 - <a,b>.  Both norm vectors are
        # precomputed in the wrapper; the row vector carries +inf on padded columns so
        # they can never be mined as negatives (and never match as positives, label -1).
        hd = (sqhc_ref[...] + sqhr_ref[...]) - g                   # (tm, n_pad)

        mask = tcol_ref[...] == trow_ref[...]                      # (tm, n_pad) same-identity

        ap_h = jnp.max(jnp.where(mask, hd, jnp.float32(-jnp.inf)), axis=1, keepdims=True)
        an_h = jnp.min(jnp.where(mask, jnp.float32(jnp.inf), hd), axis=1, keepdims=True)

        # Undo the 0.5 and take sqrt only on the 2*tm mined values (monotone, exact).
        dist_ap = jnp.sqrt(jnp.maximum(2.0 * ap_h, 1e-12))         # (tm, 1)
        dist_an = jnp.sqrt(jnp.maximum(2.0 * an_h, 1e-12))         # (tm, 1)

        # Padded rows contribute neither to the loss sum nor to `correct`.
        row_ids = lax.broadcasted_iota(jnp.int32, (tm, 1), 0) + i * tm
        row_valid = row_ids < n_real                                # (tm, 1) bool

        elem = jnp.where(row_valid,
                         jnp.maximum(margin + dist_ap - dist_an, 0.0),
                         0.0)                                       # (tm, 1)
        ge = jnp.where(jnp.logical_and(row_valid, dist_an >= dist_ap), 1.0, 0.0)

        out_ref[0, :, 0:1] = jnp.sum(elem, axis=0, keepdims=True)   # per-tile loss sum
        out_ref[0, :, 1:2] = jnp.sum(ge, axis=0, keepdims=True)     # per-tile correct sum

    return kernel


def ori_triplet_loss(inputs, targets, *, margin=MARGIN, use_bf16_gram=False,
                     gram_precision=lax.Precision.HIGHEST):
    """Returns (loss: f32 scalar, correct: i32 scalar) — same semantics as the PyTorch module."""
    n, d = inputs.shape
    kind = _device_kind()

    d_pad = _round_up(d, 128)
    n_pad, tm = _pick_row_tiles(n, kind)
    num_tiles = n_pad // tm

    x32 = jnp.pad(inputs.astype(jnp.float32), ((0, n_pad - n), (0, d_pad - d)))

    # Hoisted squared norms (exact, from f32), pre-scaled by 0.5 for the half-distance trick.
    sumsq_h = 0.5 * jnp.sum(x32 * x32, axis=1)                       # (n_pad,)
    sqh_col = sumsq_h.reshape(n_pad, 1)                              # per-tile row norms
    col_ids = jnp.arange(n_pad, dtype=jnp.int32)
    sqh_row = jnp.where(col_ids < n, sumsq_h, jnp.inf).reshape(1, n_pad)  # +inf on pad cols

    # Wrapper-side cast for the fast bf16 Gram path (halves DMA bytes & resident VMEM).
    if use_bf16_gram:
        x = x32.astype(jnp.bfloat16)
        precision = None
    else:
        x = x32
        precision = gram_precision

    t = jnp.pad(targets.astype(jnp.int32), (0, n_pad - n), constant_values=-1)
    tcol = t.reshape(n_pad, 1)
    trow = t.reshape(1, n_pad)

    kernel = _make_kernel(n, tm, float(margin), precision)

    # TODO(synk): for very large batches where the resident x block no longer fits the
    # v7x 64 MiB VMEM budget, add a second ("arbitrary") grid axis over column tiles with
    # running ap/an scratch + pl.when init/finalize instead of the full resident block.
    parts = pl.pallas_call(
        kernel,
        out_shape=jax.ShapeDtypeStruct((num_tiles, 1, 2), jnp.float32),
        grid=(num_tiles,),
        in_specs=[
            pl.BlockSpec((n_pad, d_pad), lambda i: (0, 0)),   # full x, resident (single stream)
            pl.BlockSpec((tm, 1), lambda i: (i, 0)),          # 0.5*row norms, this tile
            pl.BlockSpec((1, n_pad), lambda i: (0, 0)),       # 0.5*col norms (+inf on padding)
            pl.BlockSpec((tm, 1), lambda i: (i, 0)),          # labels, column view (tile rows)
            pl.BlockSpec((1, n_pad), lambda i: (0, 0)),       # labels, row view
        ],
        out_specs=pl.BlockSpec((1, 1, 2), lambda i: (i, 0, 0)),  # [loss_sum, correct_sum]
        compiler_params=pltpu.CompilerParams(
            dimension_semantics=("parallel",),
            vmem_limit_bytes=_vmem_limit_bytes(kind, x.size * x.dtype.itemsize, tm, n_pad),
        ),
    )(x, sqh_col, sqh_row, tcol, trow)

    loss = jnp.sum(parts[:, 0, 0]) / jnp.float32(n)     # mean over REAL rows only
    correct = jnp.sum(parts[:, 0, 1]).astype(jnp.int32)
    return loss, correct


def _reference(inputs, targets, margin=MARGIN):
    """Pure-JAX reference mirroring the PyTorch forward, for a sanity check."""
    x = inputs.astype(jnp.float32)
    sq = jnp.sum(x * x, axis=1, keepdims=True)
    gram = jnp.matmul(x, x.T, precision=lax.Precision.HIGHEST)
    dist2 = sq + sq.T - 2.0 * gram
    dist = jnp.sqrt(jnp.maximum(dist2, 1e-12))
    mask = targets[:, None] == targets[None, :]
    dist_ap = jnp.max(jnp.where(mask, dist, -jnp.inf), axis=1)
    dist_an = jnp.min(jnp.where(mask, jnp.inf, dist), axis=1)
    loss = jnp.mean(jnp.maximum(margin + dist_ap - dist_an, 0.0))
    correct = jnp.sum((dist_an >= dist_ap).astype(jnp.int32))
    return loss, correct


if __name__ == "__main__":
    key = jax.random.PRNGKey(0)
    k1, k2 = jax.random.split(key)

    # Small batch consistent with the module: 8 samples (4 identities x 2), feat_dim 32.
    n, feat_dim = 8, 32
    inputs = jax.random.normal(k1, (n, feat_dim), dtype=jnp.float32)
    targets = jnp.array([0, 0, 1, 1, 2, 2, 3, 3], dtype=jnp.int32)

    loss, correct = ori_triplet_loss(inputs, targets)
    loss = jax.block_until_ready(loss)
    correct = jax.block_until_ready(correct)

    ref_loss, ref_correct = _reference(inputs, targets)
    assert jnp.allclose(loss, ref_loss, rtol=1e-4, atol=1e-5), (loss, ref_loss)
    assert int(correct) == int(ref_correct), (correct, ref_correct)

    # Unaligned n/d exercise padding + the multi-tile "parallel" grid
    # (160 rows, 40 features -> padded to 256 x 128, grid of 2 row tiles).
    n2, d2 = 160, 40
    inputs2 = jax.random.normal(k2, (n2, d2), dtype=jnp.float32)
    targets2 = jnp.arange(n2, dtype=jnp.int32) // 4          # 40 identities x 4 samples
    loss2, correct2 = ori_triplet_loss(inputs2, targets2)
    loss2 = jax.block_until_ready(loss2)
    correct2 = jax.block_until_ready(correct2)
    ref_loss2, ref_correct2 = _reference(inputs2, targets2)
    assert jnp.allclose(loss2, ref_loss2, rtol=2e-4, atol=1e-4), (loss2, ref_loss2)
    assert int(correct2) == int(ref_correct2), (correct2, ref_correct2)

    # Fast bf16-Gram path: make sure it compiles/runs and produces a sane result.
    loss3, correct3 = ori_triplet_loss(inputs2, targets2, use_bf16_gram=True)
    loss3 = jax.block_until_ready(loss3)
    correct3 = jax.block_until_ready(correct3)
    assert bool(jnp.isfinite(loss3)) and 0 <= int(correct3) <= n2, (loss3, correct3)

    print("KERNEL_OK")
</pallas_src>

<mosaic_0001>
module attributes {stable_mosaic.version = 11 : i64} {
  func.func @kernel(%arg0: i32, %arg1: memref<8x128xf32, #tpu.memory_space<vmem>>, %arg2: memref<8x1xf32, #tpu.memory_space<vmem>>, %arg3: memref<1x8xf32, #tpu.memory_space<vmem>>, %arg4: memref<8x1xi32, #tpu.memory_space<vmem>>, %arg5: memref<1x8xi32, #tpu.memory_space<vmem>>, %arg6: memref<1x1x2xf32, #tpu.memory_space<vmem>>) attributes {dimension_semantics = [#tpu.dimension_semantics<parallel>], iteration_bounds = array<i64: 1>, scalar_prefetch = 0 : i64, scratch_operands = 0 : i64, tpu.core_type = #tpu.core_type<tc>, window_params = [{pipeline_mode = #tpu.pipeline_mode<synchronous>, transform_indices = @transform_0, window_bounds = array<i64: 8, 128>}, {transform_indices = @transform_1, window_bounds = array<i64: 8, 1>}, {pipeline_mode = #tpu.pipeline_mode<synchronous>, transform_indices = @transform_2, window_bounds = array<i64: 1, 8>}, {transform_indices = @transform_3, window_bounds = array<i64: 8, 1>}, {pipeline_mode = #tpu.pipeline_mode<synchronous>, transform_indices = @transform_4, window_bounds = array<i64: 1, 8>}, {transform_indices = @transform_5, window_bounds = array<i64: 1, 1, 2>}]} {
    %c8_i32 = arith.constant 8 : i32
    %0 = arith.muli %arg0, %c8_i32 : i32
    %1 = tpu.assume_multiple %0, 8 : i32
    %c0 = arith.constant 0 : index
    %c0_0 = arith.constant 0 : index
    %2 = vector.load %arg1[%c0, %c0_0] : memref<8x128xf32, #tpu.memory_space<vmem>>, vector<8x128xf32>
    %3 = arith.index_cast %1 : i32 to index
    %c0_1 = arith.constant 0 : index
    %4 = vector.load %arg1[%3, %c0_1] : memref<8x128xf32, #tpu.memory_space<vmem>>, vector<8x128xf32>
    %cst = arith.constant dense<0.000000e+00> : vector<8x8xf32>
    %5 = tpu.matmul %4, %2, %cst {dimension_numbers = #tpu.dot_dimension_numbers<[1], [1], [0], [0], [0, 0, 1, 0], [], []>, precision = #tpu.contract_precision<fp32>} : vector<8x128xf32>, vector<8x128xf32>, vector<8x8xf32> -> vector<8x8xf32>
    %c0_2 = arith.constant 0 : index
    %c0_3 = arith.constant 0 : index
    %6 = vector.load %arg2[%c0_2, %c0_3] : memref<8x1xf32, #tpu.memory_space<vmem>>, vector<8x1xf32>
    %c0_4 = arith.constant 0 : index
    %c0_5 = arith.constant 0 : index
    %7 = vector.load %arg3[%c0_4, %c0_5] : memref<1x8xf32, #tpu.memory_space<vmem>>, vector<1x8xf32>
    %8 = vector.broadcast %6 : vector<8x1xf32> to vector<8x8xf32>
    %9 = vector.broadcast %7 : vector<1x8xf32> to vector<8x8xf32>
    %10 = arith.addf %8, %9 : vector<8x8xf32>
    %11 = arith.subf %10, %5 : vector<8x8xf32>
    %c0_6 = arith.constant 0 : index
    %c0_7 = arith.constant 0 : index
    %12 = vector.load %arg4[%c0_6, %c0_7] : memref<8x1xi32, #tpu.memory_space<vmem>>, vector<8x1xi32>
    %c0_8 = arith.constant 0 : index
    %c0_9 = arith.constant 0 : index
    %13 = vector.load %arg5[%c0_8, %c0_9] : memref<1x8xi32, #tpu.memory_space<vmem>>, vector<1x8xi32>
    %14 = vector.broadcast %12 : vector<8x1xi32> to vector<8x8xi32>
    %15 = vector.broadcast %13 : vector<1x8xi32> to vector<8x8xi32>
    %16 = arith.cmpi eq, %14, %15 : vector<8x8xi32>
    %cst_10 = arith.constant 0xFF800000 : f32
    %17 = vector.broadcast %cst_10 : f32 to vector<8x8xf32>
    %18 = arith.select %16, %11, %17 : vector<8x8xi1>, vector<8x8xf32>
    %cst_11 = arith.constant dense<0xFF800000> : vector<8xf32>
    %19 = vector.multi_reduction <maximumf>, %18, %cst_11 [1] : vector<8x8xf32> to vector<8xf32>
    %20 = vector.shape_cast %19 : vector<8xf32> to vector<8x1xf32>
    %cst_12 = arith.constant 0x7F800000 : f32
    %21 = vector.broadcast %cst_12 : f32 to vector<8x8xf32>
    %22 = arith.select %16, %21, %11 : vector<8x8xi1>, vector<8x8xf32>
    %cst_13 = arith.constant dense<0x7F800000> : vector<8xf32>
    %23 = vector.multi_reduction <minimumf>, %22, %cst_13 [1] : vector<8x8xf32> to vector<8xf32>
    %24 = vector.shape_cast %23 : vector<8xf32> to vector<8x1xf32>
    %cst_14 = arith.constant 2.000000e+00 : f32
    %25 = vector.broadcast %cst_14 : f32 to vector<8x1xf32>
    %26 = arith.mulf %25, %20 : vector<8x1xf32>
    %cst_15 = arith.constant 9.99999996E-13 : f32
    %27 = vector.broadcast %cst_15 : f32 to vector<8x1xf32>
    %28 = arith.maximumf %26, %27 : vector<8x1xf32>
    %29 = math.sqrt %28 : vector<8x1xf32>
    %cst_16 = arith.constant 2.000000e+00 : f32
    %30 = vector.broadcast %cst_16 : f32 to vector<8x1xf32>
    %31 = arith.mulf %30, %24 : vector<8x1xf32>
    %cst_17 = arith.constant 9.99999996E-13 : f32
    %32 = vector.broadcast %cst_17 : f32 to vector<8x1xf32>
    %33 = arith.maximumf %31, %32 : vector<8x1xf32>
    %34 = math.sqrt %33 : vector<8x1xf32>
    %35 = tpu.iota {dimensions = array<i32: 0>} : vector<8x1xi32>
    %c8_i32_18 = arith.constant 8 : i32
    %36 = arith.muli %arg0, %c8_i32_18 : i32
    %37 = vector.broadcast %36 : i32 to vector<8x1xi32>
    %38 = arith.addi %35, %37 : vector<8x1xi32>
    %c8_i32_19 = arith.constant 8 : i32
    %39 = vector.broadcast %c8_i32_19 : i32 to vector<8x1xi32>
    %40 = arith.cmpi slt, %38, %39 : vector<8x1xi32>
    %cst_20 = arith.constant 3.000000e-01 : f32
    %41 = vector.broadcast %cst_20 : f32 to vector<8x1xf32>
    %42 = arith.addf %41, %29 : vector<8x1xf32>
    %43 = arith.subf %42, %34 : vector<8x1xf32>
    %cst_21 = arith.constant 0.000000e+00 : f32
    %44 = vector.broadcast %cst_21 : f32 to vector<8x1xf32>
    %45 = arith.maximumf %43, %44 : vector<8x1xf32>
    %cst_22 = arith.constant 0.000000e+00 : f32
    %46 = vector.broadcast %cst_22 : f32 to vector<8x1xf32>
    %47 = arith.select %40, %45, %46 : vector<8x1xi1>, vector<8x1xf32>
    %48 = arith.cmpf oge, %34, %29 : vector<8x1xf32>
    %49 = arith.andi %40, %48 : vector<8x1xi1>
    %cst_23 = arith.constant 1.000000e+00 : f32
    %cst_24 = arith.constant 0.000000e+00 : f32
    %50 = vector.broadcast %cst_23 : f32 to vector<8x1xf32>
    %51 = vector.broadcast %cst_24 : f32 to vector<8x1xf32>
    %52 = arith.select %49, %50, %51 : vector<8x1xi1>, vector<8x1xf32>
    %cst_25 = arith.constant dense<0.000000e+00> : vector<1xf32>
    %53 = vector.multi_reduction <add>, %47, %cst_25 [0] : vector<8x1xf32> to vector<1xf32>
    %54 = vector.shape_cast %53 : vector<1xf32> to vector<1x1xf32>
    %c0_26 = arith.constant 0 : index
    %c0_27 = arith.constant 0 : index
    %c0_28 = arith.constant 0 : index
    %55 = vector.load %arg6[%c0_26, %c0_27, %c0_28] : memref<1x1x2xf32, #tpu.memory_space<vmem>>, vector<1x1x1xf32>
    %56 = vector.shape_cast %55 : vector<1x1x1xf32> to vector<1x1xf32>
    %57 = vector.shape_cast %54 : vector<1x1xf32> to vector<1x1x1xf32>
    tpu.vector_store %arg6[%c0_26, %c0_27, %c0_28], %57 {strides = array<i32>} : memref<1x1x2xf32, #tpu.memory_space<vmem>>, vector<1x1x1xf32>,
    %cst_29 = arith.constant dense<0.000000e+00> : vector<1xf32>
    %58 = vector.multi_reduction <add>, %52, %cst_29 [0] : vector<8x1xf32> to vector<1xf32>
    %59 = vector.shape_cast %58 : vector<1xf32> to vector<1x1xf32>
    %c0_30 = arith.constant 0 : index
    %c0_31 = arith.constant 0 : index
    %c1 = arith.constant 1 : index
    %60 = vector.load %arg6[%c0_30, %c0_31, %c1] : memref<1x1x2xf32, #tpu.memory_space<vmem>>, vector<1x1x1xf32>
    %61 = vector.shape_cast %60 : vector<1x1x1xf32> to vector<1x1xf32>
    %62 = vector.shape_cast %59 : vector<1x1xf32> to vector<1x1x1xf32>
    tpu.vector_store %arg6[%c0_30, %c0_31, %c1], %62 {strides = array<i32>} : memref<1x1x2xf32, #tpu.memory_space<vmem>>, vector<1x1x1xf32>,
    return
  }
  func.func @transform_0(%arg0: i32) -> (i32, i32) {
    %c0_i32 = arith.constant 0 : i32
    %c0_i32_0 = arith.constant 0 : i32
    %c0_i32_1 = arith.constant 0 : i32
    return %c0_i32, %c0_i32_0 : i32, i32
  }
  func.func @transform_1(%arg0: i32) -> (i32, i32) {
    %c0_i32 = arith.constant 0 : i32
    %c0_i32_0 = arith.constant 0 : i32
    return %arg0, %c0_i32 : i32, i32
  }
  func.func @transform_2(%arg0: i32) -> (i32, i32) {
    %c0_i32 = arith.constant 0 : i32
    %c0_i32_0 = arith.constant 0 : i32
    %c0_i32_1 = arith.constant 0 : i32
    return %c0_i32, %c0_i32_0 : i32, i32
  }
  func.func @transform_3(%arg0: i32) -> (i32, i32) {
    %c0_i32 = arith.constant 0 : i32
    %c0_i32_0 = arith.constant 0 : i32
    return %arg0, %c0_i32 : i32, i32
  }
  func.func @transform_4(%arg0: i32) -> (i32, i32) {
    %c0_i32 = arith.constant 0 : i32
    %c0_i32_0 = arith.constant 0 : i32
    %c0_i32_1 = arith.constant 0 : i32
    return %c0_i32, %c0_i32_0 : i32, i32
  }
  func.func @transform_5(%arg0: i32) -> (i32, i32, i32) {
    %c0_i32 = arith.constant 0 : i32
    %c0_i32_0 = arith.constant 0 : i32
    %c0_i32_1 = arith.constant 0 : i32
    return %arg0, %c0_i32, %c0_i32_0 : i32, i32, i32
  }
}

</mosaic_0001>

<bundles_post_ra>
// kernel: tpu_custom_call.1
= control target key start
LH: loop header
LB: loop body
LE: loop exit
PB: predicated region body
PF: predicated region fallthrough
CT: control target
= control target key end

     0   :  { %v307_v3 = vmov 0   ;;  %s358_s0 = inlined_call_operand.vmem [shape: f32[8,128], index: 0, kind: input, shape index: {}]   ;;  %s359_s1 = inlined_call_operand.vmem [shape: f32[8,1], index: 1, kind: input, shape index: {}]   ;;  %s360_s2 = inlined_call_operand.vmem [shape: f32[1,8], index: 2, kind: input, shape index: {}]   ;;  %s361_s3 = inlined_call_operand.vmem [shape: s32[8,1], index: 3, kind: input, shape index: {}]   ;;  %s362_s4 = inlined_call_operand.vmem [shape: s32[1,8], index: 4, kind: input, shape index: {}]   ;;  %s363_s5 = inlined_call_operand.hbm [shape: f32[1,1,2], index: 5, kind: output, shape index: {}]  }
   0x1   :  { %v22_v0 = vld [vmem:[%s358_s0] sm:$0xff]  ;;  %274 = vset.pattern.permute.xlu0 %v307_v3 }
   0x2   :  { %v171_v1 = vld [vmem:[%s359_s1] sm:$0xff]  ;;  %v40_v2 = vand.u32 4294901760, %v22_v0 }
   0x3   :  { %175 = vperm.xlu0 %274, %v171_v1  }
   0x4   :  { %10 = vsyncpa [#allocation3], 0  ;;  %v67_v4 = vsub.f32 %v22_v0, %v40_v2  ;;  %41 = vmatpush.xpose.msra.mxu0 %v40_v2  ;;  %117 = vmatpush.xpose.msra.mxu3 %v40_v2  ;;  %v183_v7 = vld [vmem:[%s361_s3] sm:$0xff]  ;;  %vm191_vm0 = vcmask 64512   ;;  %v308_v58 = vmov 0.0   ;;  %s262_s27 = sshll.u32 %s363_s5, 4  ;;  %s263_s27 = int_to_ptr.hbm [resolvable:$true] %s262_s27 }
   0x5   :  { %v275_v16 = vld [vmem:[%s360_s2] ss:$0 sm:$0xff]  ;;  %s309_s2 = smov [#allocation2]   ;;  %vm245_vm7 = vcmask 0   ;;  %vm253_vm8 = vcmask 8200  }
   0x6   :  { %94 = vmatpush.xpose.msra.mxu2 %v67_v4  ;;  %v68_v5 = vand.u32 4294901760, %v67_v4  ;;  %v276_v20 = vld [vmem:[%s362_s4] ss:$0 sm:$0xff]  ;;  %s260_s4 = sshll.u32 %s309_s2, 4  ;;  %s261_s4 = int_to_ptr.vmem [resolvable:$true] %s260_s4 }
   0x8   :  { %v69_v6 = vsub.f32 %v67_v4, %v68_v5  ;;  %121 = vmatmul.f32.vlgmr.msra.gmra.mxu3 %v68_v5  ;;  %143 = vmatpush.xpose.msrb.mxu0 %v68_v5 }
   0x9   :  { %97 = vmatmul.f32.vlgmr.msra.gmra.mxu2 %v67_v4 }
   0xa   :  { %v70_v8 = vand.u32 4294901760, %v69_v6 }
   0xb   :  { %186 = vperm.xlu0 %274, %v183_v7  }
   0xc   :  { %71 = vmatpush.xpose.msra.mxu1 %v70_v8  ;;  %47 = vmatmul.f32.vlgmr.msra.gmra.mxu0 %v70_v8 }
   0xf   :  { %73 = vmatmul.f32.vlgmr.msra.gmra.mxu1 %v40_v2 }
  0x10   :  { %165 = vmatpush.xpose.msrb.mxu1 %v40_v2 }
  0x14   :  { %145 = vmatmul.f32.vlgmr.msrb.gmra.mxu0 %v40_v2 }
  0x17   :  { %167 = vmatmul.f32.vlgmr.msrb.gmra.mxu1 %v40_v2 }
  0x75   :  { %v176_v10 = vpop.permute.xlu0 %175 }
  0x76   :  { %v181_v22 = vadd.f32 %v275_v16, %v176_v10 }
  0x7d   :  { %v187_v23 = vpop.permute.xlu0 %186 }
  0x7e   :  { %vm189_vm1 = vcmp.eq.s32.totalorder %v187_v23, %v276_v20 }
  0x89   :  { %v48_v9 = vpop.f32.mrf.mxu0 }
  0x8b   :  { %v122_v14 = vpop.f32.mrf.mxu3 }
  0x8c   :  { %v74_v11 = vpop.f32.mrf.mxu1  ;;  %v98_v12 = vpop.f32.mrf.mxu2 }
  0x8d   :  { %v75_v13 = vadd.f32 %v74_v11, %v48_v9 }
  0x8f   :  { %v99_v15 = vadd.f32 %v98_v12, %v75_v13 }
  0x91   :  { %v123_v17 = vadd.f32 %v122_v14, %v99_v15  ;;  %v146_v18 = vpop.f32.mrf.mxu0 }
  0x93   :  { %v147_v19 = vadd.f32 %v146_v18, %v123_v17 }
  0x94   :  { %v168_v21 = vpop.f32.mrf.mxu1 }
  0x95   :  { %v169_v24 = vadd.f32 %v168_v21, %v147_v19 }
  0x97   :  { %v182_v25 = vsub.f32 %v181_v22, %v169_v24 }
  0x99   :  { %v190_v26 = vsel %vm189_vm1, %v182_v25, -inf  ;;  %v195_v28 = vsel %vm189_vm1, inf, %v182_v25 }
  0x9a   :  { %v192_v27 = vsel %vm191_vm0, %v190_v26, -inf  ;;  %v196_v29 = vsel %vm191_vm0, %v195_v28, inf }
  0x9b   :  { %193 = vmax.xlane.f32.xlu1 %v192_v27 }
  0xa3   :  { %197 = vmin.xlane.f32.xlu1 %v196_v29 }
 0x10e   :  { %v194_v30 = vpop.xlane.xlu1 %193 }
 0x10f   :  { %v199_v31 = vmul.f32 2.0, %v194_v30 }
 0x111   :  { %v200_v32 = vmax.f32 %v199_v31, 1e-12 }
 0x113   :  { %277 = vrsqrt.f32 %v200_v32  ;;  %vm208_vm2 = vcmp.eq.f32.partialorder %v200_v32, inf  ;;  %v211_v49 = vand.u32 2147483648, %v200_v32  ;;  %vm210_vm3 = vcmp.eq.f32.partialorder %v200_v32, 0.0 }
 0x116   :  { %v198_v33 = vpop.xlane.xlu1 %197 }
 0x117   :  { %v213_v34 = vmul.f32 2.0, %v198_v33 }
 0x119   :  { %v278_v35 = vpop.eup %277  ;;  %v214_v36 = vmax.f32 %v213_v34, 1e-12 }
 0x11a   :  { %v202_v37 = vmul.f32 %v278_v35, %v200_v32 }
 0x11b   :  { %279 = vrsqrt.f32 %v214_v36  ;;  %vm222_vm4 = vcmp.eq.f32.partialorder %v214_v36, inf  ;;  %v225_v53 = vand.u32 2147483648, %v214_v36  ;;  %vm224_vm5 = vcmp.eq.f32.partialorder %v214_v36, 0.0 }
 0x11c   :  { %v203_v38 = vmul.f32 %v278_v35, %v202_v37 }
 0x11e   :  { %v204_v39 = vmul.f32 0.5, %v203_v38 }
 0x120   :  { %v205_v40 = vsub.f32 1.5, %v204_v39 }
 0x121   :  { %v280_v41 = vpop.eup %279 }
 0x122   :  { %v216_v42 = vmul.f32 %v280_v41, %v214_v36  ;;  %v206_v43 = vmul.f32 %v278_v35, %v205_v40 }
 0x124   :  { %v207_v44 = vmul.f32 %v206_v43, %v200_v32  ;;  %v217_v45 = vmul.f32 %v280_v41, %v216_v42 }
 0x126   :  { %v218_v46 = vmul.f32 0.5, %v217_v45  ;;  %v209_v47 = vsel %vm208_vm2, %v200_v32, %v207_v44 }
 0x127   :  { %v212_v51 = vsel %vm210_vm3, %v211_v49, %v209_v47 }
 0x128   :  { %v219_v48 = vsub.f32 1.5, %v218_v46  ;;  %v232_v55 = vadd.f32 0.3, %v212_v51 }
 0x12a   :  { %v220_v50 = vmul.f32 %v280_v41, %v219_v48 }
 0x12c   :  { %v221_v52 = vmul.f32 %v220_v50, %v214_v36 }
 0x12e   :  { %v223_v54 = vsel %vm222_vm4, %v214_v36, %v221_v52 }
 0x12f   :  { %v226_v56 = vsel %vm224_vm5, %v225_v53, %v223_v54 }
 0x130   :  { %v233_v57 = vsub.f32 %v232_v55, %v226_v56  ;;  %vm236_vm6 = vcmp.ge.f32.partialorder %v226_v56, %v212_v51 }
 0x131   :  { %v238_v59 = vsel %vm236_vm6, 1.0, %v308_v58 }
 0x132   :  { %v234_v60 = vmax.f32 %v233_v57, 0.0  ;;  %v247_v61 = vrot.slane %v238_v59, 4 }
 0x134   :  { %v239_v62 = vrot.slane %v234_v60, 4  ;;  %v248_v63 = vadd.f32 %v247_v61, %v238_v59 }
 0x136   :  { %v240_v0 = vadd.f32 %v239_v62, %v234_v60  ;;  %v249_v1 = vrot.slane %v248_v63, 2 }
 0x138   :  { %v241_v2 = vrot.slane %v240_v0, 2  ;;  %v250_v3 = vadd.f32 %v249_v1, %v248_v63 }
 0x13a   :  { %v242_v4 = vadd.f32 %v241_v2, %v240_v0  ;;  %v251_v5 = vrot.slane %v250_v3, 1 }
 0x13c   :  { %v243_v6 = vrot.slane %v242_v4, 1  ;;  %v252_v8 = vadd.f32 %v251_v5, %v250_v3 }
 0x13e   :  { %v244_v7 = vadd.f32 %v243_v6, %v242_v4 }
 0x140   :  { %246 = vst.msk [vmem:[#allocation2] sm:$0x1] %vm245_vm7, %v244_v7 }
 0x141   :  { %254 = vst.msk [vmem:[#allocation2] sm:$0x1] %vm253_vm8, %v252_v8 }
 0x142   :  { %265 = dma.vmem_to_hbm [thread:$0]  %s261_s4, 16, %s263_s27, [#allocation3]  }
 0x143   :  { %305 = dma.done.wait [#allocation3], 16  }
 0x144   :  { %306 = vsyncadd [#allocation3], 4294967280 }
 0x145   :  { %270 = vsyncpa [#allocation3], 1 }

</bundles_post_ra>
